<compile_context>
chip_gen: v7x
topology: tpu7x:2x2x1
jax: 0.10.0
libtpu: 0.0.40
codegen_flags: <defaults>
</compile_context>

<pallas_src>
import jax
import jax.numpy as jnp
from jax.experimental import pallas as pl
from jax.experimental.pallas import tpu as pltpu


def _round_up(a, b):
    return (a + b - 1) // b * b


def simulator_kernel(x_ref, lvl_ref, w_ref, b_ref, o_ref):
    x = x_ref[...].astype(jnp.float32)          # (tm, dim)
    level = lvl_ref[...]                        # (tm, 1) int32

    def lin(v, i):
        # v @ W_i + b_i on the MXU, f32 accumulation. `i` is a static int.
        return (jnp.dot(v, w_ref[i], preferred_element_type=jnp.float32)
                + b_ref[pl.ds(i, 1), :])        # (1, dim) broadcast

    # fc2(fc1(x)) is only needed for level==2 rows; feed it (or x) into the
    # shared fc3->fc4 tail.  Bit-identical to computing both paths separately.
    t = lin(lin(x, 0), 1)                       # fc2(fc1(x))
    z = jnp.where(level == 2, t, x)
    h = lin(lin(z, 2), 3)                       # fc4(fc3(z))
    out = jnp.where(level == 0, x, h)
    o_ref[...] = out.astype(o_ref.dtype)


def incomplete_feat_simulator(x_feat, x_angle, y_angle, params, *, tm=256):
    """params = (w1, b1, w2, b2, w3, b3, w4, b4) with w_i shaped (dim, dim)
    stored as (in_dim, out_dim): y = x @ w_i + b_i.  (PyTorch nn.Linear weights
    would need a transpose before being passed here.)"""
    N, dim = x_feat.shape
    w1, b1, w2, b2, w3, b3, w4, b4 = params

    # Stack parameters into two operands: (4, dim, dim) weights, (4, dim) biases.
    w_stack = jnp.stack([w1, w2, w3, w4]).astype(jnp.float32)
    b_stack = jnp.stack([b1, b2, b3, b4]).astype(jnp.float32)

    # Per-row angle level, computed once in the wrapper (first-occurrence argmax
    # matches torch.max index semantics for distinct values).
    level = jnp.maximum(jnp.argmax(x_angle, axis=-1),
                        jnp.argmax(y_angle, axis=-1)).astype(jnp.int32)[:, None]

    # Row tile: multiple of 8, no larger than the (padded) row count.
    tm = max(8, min(_round_up(tm, 8), _round_up(N, 8)))
    Np = _round_up(N, tm)
    if Np != N:
        # Pad rows have level 0 -> identity path -> harmless, sliced off below.
        x_pad = jnp.pad(x_feat, ((0, Np - N), (0, 0)))
        lvl_pad = jnp.pad(level, ((0, Np - N), (0, 0)))
    else:
        x_pad, lvl_pad = x_feat, level

    n_tiles = Np // tm
    row_spec = pl.BlockSpec((tm, dim), lambda i: (i, 0))
    lvl_spec = pl.BlockSpec((tm, 1), lambda i: (i, 0))
    w_spec = pl.BlockSpec((4, dim, dim), lambda i: (0, 0, 0))  # constant block
    b_spec = pl.BlockSpec((4, dim), lambda i: (0, 0))          # -> single DMA

    out = pl.pallas_call(
        simulator_kernel,
        out_shape=jax.ShapeDtypeStruct((Np, dim), x_feat.dtype),
        grid=(n_tiles,),
        in_specs=[row_spec, lvl_spec, w_spec, b_spec],
        out_specs=row_spec,
        compiler_params=pltpu.CompilerParams(
            dimension_semantics=("parallel",)),
        cost_estimate=pl.CostEstimate(
            flops=int(4 * 2 * Np * dim * dim),
            transcendentals=0,
            bytes_accessed=int((2 * Np * dim + 4 * dim * dim) * 4),
        ),
    )(x_pad, lvl_pad, w_stack, b_stack)
    return out[:N]


def _make_params(key, dim):
    """Deterministic nn.Linear-style init: U(-1/sqrt(dim), 1/sqrt(dim))."""
    bound = 1.0 / jnp.sqrt(dim)
    params = []
    for _ in range(4):
        key, kw, kb = jax.random.split(key, 3)
        w = jax.random.uniform(kw, (dim, dim), jnp.float32, -bound, bound)
        b = jax.random.uniform(kb, (dim,), jnp.float32, -bound, bound)
        params += [w, b]
    return tuple(params)


def _reference(x_feat, x_angle, y_angle, params):
    w1, b1, w2, b2, w3, b3, w4, b4 = params
    level = jnp.maximum(jnp.argmax(x_angle, -1), jnp.argmax(y_angle, -1))[:, None]
    h3 = (((x_feat @ w1 + b1) @ w2 + b2) @ w3 + b3) @ w4 + b4
    h2 = (x_feat @ w3 + b3) @ w4 + b4
    return jnp.where(level == 2, h3, jnp.where(level == 1, h2, x_feat))


if __name__ == "__main__":
    key = jax.random.PRNGKey(0)
    # Small shapes: 200 RoIs (exercises the padding path), 128-d feature,
    # 3 angle levels.  tm=128 -> padded to 256 rows, grid of 2 parallel steps.
    N, dim, A = 200, 128, 3

    k_feat, k_xa, k_ya, k_par = jax.random.split(key, 4)
    x_feat = jax.random.normal(k_feat, (N, dim), jnp.float32)
    x_angle = jax.random.normal(k_xa, (N, A), jnp.float32)
    y_angle = jax.random.normal(k_ya, (N, A), jnp.float32)
    params = _make_params(k_par, dim)

    out = incomplete_feat_simulator(x_feat, x_angle, y_angle, params, tm=128)
    out = jax.block_until_ready(out)

    ref = _reference(x_feat, x_angle, y_angle, params)
    assert out.shape == (N, dim) and out.dtype == jnp.float32
    assert jnp.allclose(out, ref, atol=1e-4, rtol=1e-4)

    # TODO(synk): U_block / block1 / block2 and loss_simulate are unused by
    # forward() and intentionally not implemented.
    print("KERNEL_OK")
</pallas_src>

<mosaic_0001>
module attributes {stable_mosaic.version = 11 : i64} {
  func.func @simulator_kernel(%arg0: i32, %arg1: memref<128x128xf32, #tpu.memory_space<vmem>>, %arg2: memref<128x1xi32, #tpu.memory_space<vmem>>, %arg3: memref<4x128x128xf32, #tpu.memory_space<vmem>>, %arg4: memref<4x128xf32, #tpu.memory_space<vmem>>, %arg5: memref<128x128xf32, #tpu.memory_space<vmem>>) attributes {dimension_semantics = [#tpu.dimension_semantics<parallel>], iteration_bounds = array<i64: 2>, scalar_prefetch = 0 : i64, scratch_operands = 0 : i64, tpu.core_type = #tpu.core_type<tc>, window_params = [{transform_indices = @transform_0, window_bounds = array<i64: 128, 128>}, {transform_indices = @transform_1, window_bounds = array<i64: 128, 1>}, {pipeline_mode = #tpu.pipeline_mode<synchronous>, transform_indices = @transform_2, window_bounds = array<i64: 4, 128, 128>}, {pipeline_mode = #tpu.pipeline_mode<synchronous>, transform_indices = @transform_3, window_bounds = array<i64: 4, 128>}, {transform_indices = @transform_4, window_bounds = array<i64: 128, 128>}]} {
    %c0 = arith.constant 0 : index
    %c0_0 = arith.constant 0 : index
    %0 = vector.load %arg1[%c0, %c0_0] : memref<128x128xf32, #tpu.memory_space<vmem>>, vector<128x128xf32>
    %c0_1 = arith.constant 0 : index
    %c0_2 = arith.constant 0 : index
    %1 = vector.load %arg2[%c0_1, %c0_2] : memref<128x1xi32, #tpu.memory_space<vmem>>, vector<128x1xi32>
    %c0_3 = arith.constant 0 : index
    %c0_4 = arith.constant 0 : index
    %c0_5 = arith.constant 0 : index
    %2 = vector.load %arg3[%c0_3, %c0_4, %c0_5] : memref<4x128x128xf32, #tpu.memory_space<vmem>>, vector<1x128x128xf32>
    %3 = vector.shape_cast %2 : vector<1x128x128xf32> to vector<128x128xf32>
    %cst = arith.constant dense<0.000000e+00> : vector<128x128xf32>
    %4 = tpu.matmul %0, %3, %cst {dimension_numbers = #tpu.dot_dimension_numbers<[1], [0], [0], [1], [0, 0, 1, 1], [], []>} : vector<128x128xf32>, vector<128x128xf32>, vector<128x128xf32> -> vector<128x128xf32>
    %c0_6 = arith.constant 0 : index
    %c0_7 = arith.constant 0 : index
    %5 = vector.load %arg4[%c0_6, %c0_7] : memref<4x128xf32, #tpu.memory_space<vmem>>, vector<1x128xf32>
    %6 = vector.broadcast %5 : vector<1x128xf32> to vector<128x128xf32>
    %7 = arith.addf %4, %6 : vector<128x128xf32>
    %c1 = arith.constant 1 : index
    %c0_8 = arith.constant 0 : index
    %c0_9 = arith.constant 0 : index
    %8 = vector.load %arg3[%c1, %c0_8, %c0_9] : memref<4x128x128xf32, #tpu.memory_space<vmem>>, vector<1x128x128xf32>
    %9 = vector.shape_cast %8 : vector<1x128x128xf32> to vector<128x128xf32>
    %cst_10 = arith.constant dense<0.000000e+00> : vector<128x128xf32>
    %10 = tpu.matmul %7, %9, %cst_10 {dimension_numbers = #tpu.dot_dimension_numbers<[1], [0], [0], [1], [0, 0, 1, 1], [], []>} : vector<128x128xf32>, vector<128x128xf32>, vector<128x128xf32> -> vector<128x128xf32>
    %c1_11 = arith.constant 1 : index
    %c0_12 = arith.constant 0 : index
    %11 = vector.load %arg4[%c1_11, %c0_12] : memref<4x128xf32, #tpu.memory_space<vmem>>, vector<1x128xf32>
    %12 = vector.broadcast %11 : vector<1x128xf32> to vector<128x128xf32>
    %13 = arith.addf %10, %12 : vector<128x128xf32>
    %c2_i32 = arith.constant 2 : i32
    %14 = vector.broadcast %c2_i32 : i32 to vector<128x1xi32>
    %15 = arith.cmpi eq, %1, %14 : vector<128x1xi32>
    %16 = vector.shape_cast %15 : vector<128x1xi1> to vector<128x1xi1>
    %17 = vector.broadcast %16 : vector<128x1xi1> to vector<128x128xi1>
    %18 = arith.select %17, %13, %0 : vector<128x128xi1>, vector<128x128xf32>
    %c2 = arith.constant 2 : index
    %c0_13 = arith.constant 0 : index
    %c0_14 = arith.constant 0 : index
    %19 = vector.load %arg3[%c2, %c0_13, %c0_14] : memref<4x128x128xf32, #tpu.memory_space<vmem>>, vector<1x128x128xf32>
    %20 = vector.shape_cast %19 : vector<1x128x128xf32> to vector<128x128xf32>
    %cst_15 = arith.constant dense<0.000000e+00> : vector<128x128xf32>
    %21 = tpu.matmul %18, %20, %cst_15 {dimension_numbers = #tpu.dot_dimension_numbers<[1], [0], [0], [1], [0, 0, 1, 1], [], []>} : vector<128x128xf32>, vector<128x128xf32>, vector<128x128xf32> -> vector<128x128xf32>
    %c2_16 = arith.constant 2 : index
    %c0_17 = arith.constant 0 : index
    %22 = vector.load %arg4[%c2_16, %c0_17] : memref<4x128xf32, #tpu.memory_space<vmem>>, vector<1x128xf32>
    %23 = vector.broadcast %22 : vector<1x128xf32> to vector<128x128xf32>
    %24 = arith.addf %21, %23 : vector<128x128xf32>
    %c3 = arith.constant 3 : index
    %c0_18 = arith.constant 0 : index
    %c0_19 = arith.constant 0 : index
    %25 = vector.load %arg3[%c3, %c0_18, %c0_19] : memref<4x128x128xf32, #tpu.memory_space<vmem>>, vector<1x128x128xf32>
    %26 = vector.shape_cast %25 : vector<1x128x128xf32> to vector<128x128xf32>
    %cst_20 = arith.constant dense<0.000000e+00> : vector<128x128xf32>
    %27 = tpu.matmul %24, %26, %cst_20 {dimension_numbers = #tpu.dot_dimension_numbers<[1], [0], [0], [1], [0, 0, 1, 1], [], []>} : vector<128x128xf32>, vector<128x128xf32>, vector<128x128xf32> -> vector<128x128xf32>
    %c3_21 = arith.constant 3 : index
    %c0_22 = arith.constant 0 : index
    %28 = vector.load %arg4[%c3_21, %c0_22] : memref<4x128xf32, #tpu.memory_space<vmem>>, vector<1x128xf32>
    %29 = vector.broadcast %28 : vector<1x128xf32> to vector<128x128xf32>
    %30 = arith.addf %27, %29 : vector<128x128xf32>
    %c0_i32 = arith.constant 0 : i32
    %31 = vector.broadcast %c0_i32 : i32 to vector<128x1xi32>
    %32 = arith.cmpi eq, %1, %31 : vector<128x1xi32>
    %33 = vector.shape_cast %32 : vector<128x1xi1> to vector<128x1xi1>
    %34 = vector.broadcast %33 : vector<128x1xi1> to vector<128x128xi1>
    %35 = arith.select %34, %0, %30 : vector<128x128xi1>, vector<128x128xf32>
    %c0_23 = arith.constant 0 : index
    %c0_24 = arith.constant 0 : index
    %36 = vector.load %arg5[%c0_23, %c0_24] : memref<128x128xf32, #tpu.memory_space<vmem>>, vector<128x128xf32>
    tpu.vector_store %arg5[%c0_23, %c0_24], %35 {strides = array<i32>} : memref<128x128xf32, #tpu.memory_space<vmem>>, vector<128x128xf32>,
    return
  }
  func.func @transform_0(%arg0: i32) -> (i32, i32) {
    %c0_i32 = arith.constant 0 : i32
    %c0_i32_0 = arith.constant 0 : i32
    return %arg0, %c0_i32 : i32, i32
  }
  func.func @transform_1(%arg0: i32) -> (i32, i32) {
    %c0_i32 = arith.constant 0 : i32
    %c0_i32_0 = arith.constant 0 : i32
    return %arg0, %c0_i32 : i32, i32
  }
  func.func @transform_2(%arg0: i32) -> (i32, i32, i32) {
    %c0_i32 = arith.constant 0 : i32
    %c0_i32_0 = arith.constant 0 : i32
    %c0_i32_1 = arith.constant 0 : i32
    %c0_i32_2 = arith.constant 0 : i32
    return %c0_i32, %c0_i32_0, %c0_i32_1 : i32, i32, i32
  }
  func.func @transform_3(%arg0: i32) -> (i32, i32) {
    %c0_i32 = arith.constant 0 : i32
    %c0_i32_0 = arith.constant 0 : i32
    %c0_i32_1 = arith.constant 0 : i32
    return %c0_i32, %c0_i32_0 : i32, i32
  }
  func.func @transform_4(%arg0: i32) -> (i32, i32) {
    %c0_i32 = arith.constant 0 : i32
    %c0_i32_0 = arith.constant 0 : i32
    return %arg0, %c0_i32 : i32, i32
  }
}

</mosaic_0001>

<bundles_post_ra>
// kernel: tpu_custom_call.1
= control target key start
LH: loop header
LB: loop body
LE: loop exit
PB: predicated region body
PF: predicated region fallthrough
CT: control target
= control target key end

     0   :  { %9 = vsyncpa [#allocation3], 0  ;;  %s2393_s0 = inlined_call_operand.vmem [shape: f32[256,128], index: 0, kind: input, shape index: {}]   ;;  %s2394_s1 = inlined_call_operand.vmem [shape: s32[256,1], index: 1, kind: input, shape index: {}]   ;;  %s2395_s2 = inlined_call_operand.hbm [shape: f32[4,128,128], index: 2, kind: input, shape index: {}]   ;;  %s2396_s3 = inlined_call_operand.vmem [shape: f32[4,128], index: 3, kind: input, shape index: {}]   ;;  %s2397_s4 = inlined_call_operand.hbm [shape: f32[256,128], index: 4, kind: output, shape index: {}]  }
   0x1   :  { %10 = vsyncpa [#allocation4], 0 }
   0x2   :  { %12 = vsyncpa [#allocation4 + $0x1], 0  ;;  %s1961_s15 = smov 0   ;;  %s1963_s16 = smov 0  }
   0x3   :  { %s1965_s17 = smov 0   ;;  %s1967_s18 = smov 0  }
   0x4 LB: > { %s1982_s19 = sadd.s32 4294967295, %s1927_s18   ;;  %s1275_s20 = sadd.s32 4294967294, %s1927_s18   ;;  %s1927_s18 = sphi %s1967_s18, %s2413_s18   ;;  %s1923_s17 = sphi %s1965_s17, %s2412_s17   ;;  %s1919_s16 = sphi %s1963_s16, %s2411_s16   ;;  %s1915_s15 = sphi %s1961_s15, %s2410_s15  }
   0x5   : > { %s1986_s21 = sadd.s32 1, %s1927_s18   ;;  %s119_s22 = sadd.s32 1, %s1923_s17 }
   0x6   : > { %s116_s23 = ssub.s32 %s1927_s18, %s1986_s21  ;;  %p129_p0 = scmp.ne.s32.totalorder %s1923_s17, %s1919_s16 }
   0x7   : > { %p117_p1 = scmp.eq.s32.totalorder %s116_s23, 0  ;;  %p130_p2 = scmp.eq.s32.totalorder %s1982_s19, 1 }
   0x8   : > { %p135_p3 = scmp.ne.s32.totalorder %s1919_s16, %s1915_s15  ;;  %p136_p4 = scmp.eq.s32.totalorder %s1275_s20, 1 }
   0x9   : > { %s1997_s24 = scalar_select %p117_p1, %s1923_s17, %s119_s22  }
   0xa   : > { %p1999_p5 = por %p130_p2, %p129_p0  ;;  %p2003_p6 = por %p136_p4, %p135_p3 }
   0xb   : > { %p1276_p7 = scmp.ge.s32.totalorder %s1927_s18, 1  ;;  %p143_p8 = scmp.lt.s32.totalorder %s1927_s18, 3 }
   0xc   : > { %s2401_s25 = scalar_select %p1999_p5, 1, 0 }
   0xd   : > { %s2402_s26 = scalar_select %p2003_p6, 1, 0 }
   0xe   : > { %p2398_p9 = scmp.eq.s32.totalorder %s1982_s19, 0  ;;  %p2010_p10 = pnand %p1276_p7, %p143_p8 }
   0xf   : > { %s1929_s28 = smov [#allocation2]   ;;  %s1833_s7 = scalar_lea.hbm %s2395_s2, 8192 }
  0x10   : > { %s2403_s27 = scalar_select %p2010_p10, 1, 0 }
  0x11   : > { %s155_s29 = sshll.u32 %s1929_s28, 4  ;;  %p1782_p11 = pneg %p2010_p10  ;;  %s156_s29 = int_to_ptr.vmem [resolvable:$true] %s155_s29 }
  0x12   : > { %p1834_p13 = scmp.ne.s32.totalorder %s2395_s2, %s1833_s7  ;;  %p1840_p3 = scmp.lt.u32.totalorder %s1833_s7, %s2395_s2 }
  0x13   : > { %p2018_p12 = pnand %p2398_p9, %p1782_p11 }
  0x15   : > { %p1835_p0 = pneg %p2018_p12 }
  0x17   : > { %p1836_p1 = pnand %p1835_p0, %p1834_p13 }
  0x19   : > { %p1837_p2 = pneg %p1836_p1 }
  0x1b   : > { %p1842_p4 = pnand %p1840_p3, %p1837_p2 }
  0x1d   : > { %1845 = shalt.err (!%p1842_p4)
}
  0x1e   : > { %s1846_s12 = scalar_lea.vmem %s156_s29, 8192  ;;  %p1854_p9 = scmp.lt.s32.totalorder %s156_s29, %s156_s29 }
  0x1f   : > { %p1847_p7 = scmp.ne.s32.totalorder %s156_s29, %s1846_s12  ;;  %p1855_p6 = scmp.lt.s32.totalorder %s1846_s12, %s1846_s12 }
  0x21   : > { %p1849_p8 = pnand %p1847_p7, %p1835_p0  ;;  %p1856_p5 = por %p1855_p6, %p1854_p9 }
  0x23   : > { %p1850_p11 = pneg %p1849_p8 }
  0x25   : > { %p1857_p10 = pnand %p1856_p5, %p1850_p11 }
  0x27   : > { %1860 = shalt.err (!%p1857_p10)
}
  0x28   : > { %s1930_s13 = smov 128   ;;  %s1931_s14 = smov 8  }
  0x29   : > { %1785 = dma.hbm_to_vmem [thread:$0]  (!%p2018_p12), %s2395_s2, 8192, %s156_s29, [#allocation3], %s1930_s13, %s1930_s13, %s1931_s14  }
  0x2a   : > { %p2405_p13 = scmp.ne.s32.totalorder %s2403_s27, 0 }
  0x2b   : > { %p2406_p1 = scmp.eq.s32.totalorder (!%p2405_p13), %s1982_s19, 0 }
  0x2c   : > { %192 = sbr.rel (%p2405_p13) target bundleno = 995 (0x3e3), region = 36 }
  0x33   : > { %1906 = dma.done.wait (%p2406_p1), [#allocation3], 8192   ;;  %p2407_p0 = pmov %p2406_p1 }
  0x34   : > { %s1282_s23 = sshll.u32 %s1982_s19, 4  ;;  %v268_v0 = vld [vmem:[#allocation2] sm:$0xff]  ;;  %v269_v1 = vld [vmem:[#allocation2 + $0x8] sm:$0xff]  ;;  %v270_v2 = vld [vmem:[#allocation2 + $0x10] sm:$0xff]  ;;  %s220_s14 = sand.u32 1, %s1919_s16  }
  0x35   : > { %1908 = vsyncadd (%p2407_p0), [#allocation3], 4294959104  ;;  %p224_p5 = scmp.lt.s32.totalorder %s1282_s23, 31  ;;  %v1648_v3 = vpack.c.bf16 %v269_v1, %v268_v0  ;;  %v271_v4 = vld [vmem:[#allocation2 + $0x18] sm:$0xff]  ;;  %v272_v6 = vld [vmem:[#allocation2 + $0x20] sm:$0xff]  ;;  %v1932_v1 = vmov 0  }
  0x36   : > { %v1652_v5 = vpack.c.bf16 %v271_v4, %v270_v2  ;;  %v273_v7 = vld [vmem:[#allocation2 + $0x28] sm:$0xff]  ;;  %v274_v10 = vld [vmem:[#allocation2 + $0x30] sm:$0xff]  ;;  %v275_v11 = vld [vmem:[#allocation2 + $0x38] sm:$0xff]  ;;  %1831 = vset.pattern.permute.xlu0 %v1932_v1  ;;  %1832 = vset.pattern.permute.xlu1 %v1932_v1  ;;  %s1281_s20 = sshll.u32 %s220_s14, 7  ;;  %s1295_s27 = sshll.u32 %s1982_s19, 11 }
  0x37   : > { %s2415_s23 = smov (!%p224_p5, %s1282_s23), 31  ;;  %1649 = vmatprep.subr.bf16.mxu0 %v1648_v3  ;;  %v1656_v8 = vpack.c.bf16 %v273_v7, %v272_v6  ;;  %v1660_v12 = vpack.c.bf16 %v275_v11, %v274_v10  ;;  %v276_v13 = vld [vmem:[#allocation2 + $0x40] sm:$0xff]  ;;  %v277_v14 = vld [vmem:[#allocation2 + $0x48] sm:$0xff]  ;;  %v437_v17 = vld [vmem:[#allocation2 + $0x90] sm:$0xff]  ;;  %s2342_s19 = scalar_lea.hbm %s2397_s4, %s1295_s27 }
  0x38   : > { %s1283_s28 = sshll.u32 %s2415_s23, 3  ;;  %1651 = vmatpush3.bf16.msra.mxu0 %v1648_v3  ;;  %v435_v15 = vld [vmem:[#allocation2 + $0x80] sm:$0xff]  ;;  %v436_v16 = vld [vmem:[#allocation2 + $0x88] sm:$0xff]  ;;  %v438_v18 = vld [vmem:[#allocation2 + $0x98] sm:$0xff]  ;;  %v1664_v21 = vpack.c.bf16 %v277_v14, %v276_v13  ;;  %s2352_s6 = scalar_lea.sflag [#allocation4], %s220_s14 }
  0x39   : > { %s2053_s30 = scalar_lea.vmem %s2393_s0, %s1283_s28  ;;  %1653 = vmatprep.subr.bf16.mxu0 %v1652_v5  ;;  %v1680_v19 = vpack.c.bf16 %v436_v16, %v435_v15  ;;  %v1684_v20 = vpack.c.bf16 %v438_v18, %v437_v17  ;;  %v439_v22 = vld [vmem:[#allocation2 + $0xa0] sm:$0xff]  ;;  %v440_v23 = vld [vmem:[#allocation2 + $0xa8] sm:$0xff]  ;;  %v278_v24 = vld [vmem:[#allocation2 + $0x50] sm:$0xff]  ;;  %s2124_s7 = scalar_lea.vmem %s2394_s1, %s1283_s28 }
  0x3a   : > { %v2056_v9 = vld [vmem:[%s2053_s30] sm:$0xff]  ;;  %v279_v25 = vld [vmem:[#allocation2 + $0x58] sm:$0xff]  ;;  %v1688_v26 = vpack.c.bf16 %v440_v23, %v439_v22  ;;  %v441_v28 = vld [vmem:[#allocation2 + $0xb0] sm:$0xff]  ;;  %s2294_s28 = scalar_lea.vmem [#allocation5], %s1281_s20  ;;  %p2408_p9 = scmp.ne.s32.totalorder %s2401_s25, 0 }
  0x3b   : > { %1456 = vmatprep.mubr.f32.mxu0 %v2056_v9  ;;  %1681 = vmatprep.subr.bf16.mxu1 %v1680_v19  ;;  %v1668_v27 = vpack.c.bf16 %v279_v25, %v278_v24  ;;  %v442_v29 = vld [vmem:[#allocation2 + $0xb8] sm:$0xff]  ;;  %v280_v30 = vld [vmem:[#allocation2 + $0x60] sm:$0xff]  ;;  %v281_v31 = vld [vmem:[#allocation2 + $0x68] sm:$0xff]  ;;  %s1189_s29 = sshll.u32 %s2294_s28, 4  ;;  %s1933_s8 = smov [#allocation5]   ;;  %s2344_s29 = int_to_ptr.vmem [resolvable:$true] %s1189_s29 }
  0x3c   : > { %1655 = vmatpush3.bf16.msra.mxu0 %v1652_v5  ;;  %1683 = vmatpush3.bf16.msra.mxu1 %v1680_v19  ;;  %v1692_v32 = vpack.c.bf16 %v442_v29, %v441_v28  ;;  %v1672_v33 = vpack.c.bf16 %v281_v31, %v280_v30  ;;  %v443_v34 = vld [vmem:[#allocation2 + $0xc0] sm:$0xff]  ;;  %v444_v35 = vld [vmem:[#allocation2 + $0xc8] sm:$0xff]  ;;  %v282_v36 = vld [vmem:[#allocation2 + $0x70] sm:$0xff]  ;;  %s1865_s9 = sshll.u32 %s1933_s8, 4  ;;  %s1866_s9 = int_to_ptr.vmem [resolvable:$false] %s1865_s9 }
  0x3d   : > { %1657 = vmatprep.subr.bf16.mxu0 %v1656_v8  ;;  %1685 = vmatprep.subr.bf16.mxu1 %v1684_v20  ;;  %v283_v37 = vld [vmem:[#allocation2 + $0x78] sm:$0xff]  ;;  %v1696_v38 = vpack.c.bf16 %v444_v35, %v443_v34  ;;  %v445_v40 = vld [vmem:[#allocation2 + $0xd0] sm:$0xff]  ;;  %v447_v43 = vld [vmem:[#allocation2 + $0xe0] sm:$0xff]  ;;  %s1867_s10 = scalar_lea.vmem %s1866_s9, 4096  ;;  %p1868_p2 = scmp.lt.s32.totalorder %s2344_s29, %s1866_s9 }
  0x3e   : > { %v1676_v39 = vpack.c.bf16 %v283_v37, %v282_v36  ;;  %v446_v41 = vld [vmem:[#allocation2 + $0xd8] sm:$0xff]  ;;  %v448_v44 = vld [vmem:[#allocation2 + $0xe8] sm:$0xff]  ;;  %v2063_v47 = vld [vmem:[%s2053_s30 + $0x10] sm:$0xff] }
  0x3f   : > { %v1700_v42 = vpack.c.bf16 %v446_v41, %v445_v40  ;;  %v2060_v45 = vld [vmem:[%s2053_s30 + $0x8] sm:$0xff]  ;;  %v1704_v46 = vpack.c.bf16 %v448_v44, %v447_v43  ;;  %v2068_v48 = vld [vmem:[%s2053_s30 + $0x18] sm:$0xff]  ;;  %v2071_v49 = vld [vmem:[%s2053_s30 + $0x20] sm:$0xff] }
  0x40   : > { %1659 = vmatpush3.bf16.msra.mxu0 %v1656_v8  ;;  %1687 = vmatpush3.bf16.msra.mxu1 %v1684_v20  ;;  %v2076_v50 = vld [vmem:[%s2053_s30 + $0x28] sm:$0xff]  ;;  %v2079_v51 = vld [vmem:[%s2053_s30 + $0x30] sm:$0xff]  ;;  %v2084_v52 = vld [vmem:[%s2053_s30 + $0x38] sm:$0xff] }
  0x41   : > { %1661 = vmatprep.subr.bf16.mxu0 %v1660_v12  ;;  %1689 = vmatprep.subr.bf16.mxu1 %v1688_v26  ;;  %v2087_v53 = vld [vmem:[%s2053_s30 + $0x40] sm:$0xff]  ;;  %v2092_v54 = vld [vmem:[%s2053_s30 + $0x48] sm:$0xff]  ;;  %v2095_v55 = vld [vmem:[%s2053_s30 + $0x50] sm:$0xff] }
  0x42   : > { %v2100_v56 = vld [vmem:[%s2053_s30 + $0x58] sm:$0xff]  ;;  %v2103_v57 = vld [vmem:[%s2053_s30 + $0x60] sm:$0xff]  ;;  %v2108_v58 = vld [vmem:[%s2053_s30 + $0x68] sm:$0xff] }
  0x43   : > { %v2111_v59 = vld [vmem:[%s2053_s30 + $0x70] sm:$0xff]  ;;  %v2116_v60 = vld [vmem:[%s2053_s30 + $0x78] sm:$0xff]  ;;  %v2127_v0 = vld [vmem:[%s2124_s7] sm:$0xff] }
  0x44   : > { %1663 = vmatpush3.bf16.msra.mxu0 %v1660_v12  ;;  %1691 = vmatpush3.bf16.msra.mxu1 %v1688_v26  ;;  %v449_v61 = vld [vmem:[#allocation2 + $0xf0] sm:$0xff]  ;;  %v450_v62 = vld [vmem:[#allocation2 + $0xf8] sm:$0xff]  ;;  %vm601_vm0 = vcmp.eq.s32.totalorder %v2127_v0, 2  ;;  %v2137_v4 = vld [vmem:[%s2124_s7 + $0x8] sm:$0xff] }
  0x45   : > { %1665 = vmatprep.subr.bf16.mxu0 %v1664_v21  ;;  %1693 = vmatprep.subr.bf16.mxu1 %v1692_v32  ;;  %v1708_v63 = vpack.c.bf16 %v450_v62, %v449_v61  ;;  %v617_v2 = vsel %vm601_vm0, 1, %v1932_v1  ;;  %v2134_v3 = vld [vmem:[%s2124_s7 + $0x10] sm:$0xff]  ;;  %vm602_vm2 = vcmp.eq.s32.totalorder %v2137_v4, 2  ;;  %v2144_v7 = vld [vmem:[%s2124_s7 + $0x18] sm:$0xff]  ;;  %v2147_v8 = vld [vmem:[%s2124_s7 + $0x20] sm:$0xff]  ;;  %vm1047_vm0 = vcmp.eq.s32.totalorder %v2127_v0, 0 }
  0x46   : > { %634 = vperm.xlu0 %1831, %v617_v2   ;;  %vm603_vm1 = vcmp.eq.s32.totalorder %v2134_v3, 2  ;;  %v618_v6 = vsel %vm602_vm2, 1, %v1932_v1  ;;  %v2150_v10 = vld [vmem:[%s2124_s7 + $0x28] sm:$0xff]  ;;  %vm604_vm3 = vcmp.eq.s32.totalorder %v2144_v7, 2  ;;  %vm605_vm4 = vcmp.eq.s32.totalorder %v2147_v8, 2  ;;  %v2156_v11 = vld [vmem:[%s2124_s7 + $0x30] sm:$0xff] }
  0x47   : > { %v619_v5 = vsel %vm603_vm1, 1, %v1932_v1  ;;  %vm606_vm5 = vcmp.eq.s32.totalorder %v2150_v10, 2  ;;  %v620_v12 = vsel %vm604_vm3, 1, %v1932_v1  ;;  %v621_v13 = vsel %vm605_vm4, 1, %v1932_v1  ;;  %v2162_v14 = vld [vmem:[%s2124_s7 + $0x38] sm:$0xff]  ;;  %v2165_v15 = vld [vmem:[%s2124_s7 + $0x40] sm:$0xff] }
  0x48   : > { %1667 = vmatpush3.bf16.msra.mxu0 %v1664_v21  ;;  %1695 = vmatpush3.bf16.msra.mxu1 %v1692_v32  ;;  %vm607_vm6 = vcmp.eq.s32.totalorder %v2156_v11, 2  ;;  %v622_v16 = vsel %vm606_vm5, 1, %v1932_v1  ;;  %vm608_vm7 = vcmp.eq.s32.totalorder %v2162_v14, 2  ;;  %vm609_vm8 = vcmp.eq.s32.totalorder %v2165_v15, 2  ;;  %v2172_v18 = vld [vmem:[%s2124_s7 + $0x48] sm:$0xff]  ;;  %v2175_v19 = vld [vmem:[%s2124_s7 + $0x50] sm:$0xff] }
  0x49   : > { %1669 = vmatprep.subr.bf16.mxu0 %v1668_v27  ;;  %1697 = vmatprep.subr.bf16.mxu1 %v1696_v38  ;;  %v623_v17 = vsel %vm607_vm6, 1, %v1932_v1  ;;  %v624_v20 = vsel %vm608_vm7, 1, %v1932_v1  ;;  %v625_v21 = vsel %vm609_vm8, 1, %v1932_v1  ;;  %vm610_vm9 = vcmp.eq.s32.totalorder %v2172_v18, 2  ;;  %v2182_v22 = vld [vmem:[%s2124_s7 + $0x58] sm:$0xff]  ;;  %v2185_v23 = vld [vmem:[%s2124_s7 + $0x60] sm:$0xff] }
  0x4a   : > { %640 = vperm.xlu1 %1832, %v619_v5   ;;  %637 = vperm.xlu0 %1831, %v618_v6   ;;  %vm611_vm10 = vcmp.eq.s32.totalorder %v2175_v19, 2  ;;  %v626_v24 = vsel %vm610_vm9, 1, %v1932_v1  ;;  %vm612_vm11 = vcmp.eq.s32.totalorder %v2182_v22, 2  ;;  %vm613_vm12 = vcmp.eq.s32.totalorder %v2185_v23, 2  ;;  %v2192_v26 = vld [vmem:[%s2124_s7 + $0x68] sm:$0xff]  ;;  %v2202_v30 = vld [vmem:[%s2124_s7 + $0x78] sm:$0xff] }
  0x4b   : > { %v627_v25 = vsel %vm611_vm10, 1, %v1932_v1  ;;  %v628_v28 = vsel %vm612_vm11, 1, %v1932_v1  ;;  %v629_v29 = vsel %vm613_vm12, 1, %v1932_v1  ;;  %vm614_vm13 = vcmp.eq.s32.totalorder %v2192_v26, 2  ;;  %v714_v35 = vld [vmem:[#allocation2 + $0x100] sm:$0xff]  ;;  %v715_v36 = vld [vmem:[#allocation2 + $0x108] sm:$0xff] }
  0x4c   : > { %1671 = vmatpush3.bf16.msra.mxu0 %v1668_v27  ;;  %1699 = vmatpush3.bf16.msra.mxu1 %v1696_v38  ;;  %v2195_v27 = vld [vmem:[%s2124_s7 + $0x70] sm:$0xff]  ;;  %v630_v31 = vsel %vm614_vm13, 1, %v1932_v1  ;;  %vm616_vm15 = vcmp.eq.s32.totalorder %v2202_v30, 2  ;;  %v1063_v34 = vsel %vm1047_vm0, 1, %v1932_v1  ;;  %vm1048_vm1 = vcmp.eq.s32.totalorder %v2137_v4, 0  ;;  %v717_v41 = vld [vmem:[#allocation2 + $0x118] sm:$0xff] }
  0x4d   : > { %1673 = vmatprep.subr.bf16.mxu0 %v1672_v33  ;;  %1701 = vmatprep.subr.bf16.mxu1 %v1700_v42  ;;  %vm615_vm14 = vcmp.eq.s32.totalorder %v2195_v27, 2  ;;  %vm1049_vm2 = vcmp.eq.s32.totalorder %v2134_v3, 0  ;;  %v1064_v37 = vsel %vm1048_vm1, 1, %v1932_v1  ;;  %vm1050_vm3 = vcmp.eq.s32.totalorder %v2144_v7, 0  ;;  %v716_v40 = vld [vmem:[#allocation2 + $0x110] sm:$0xff]  ;;  %v719_v61 = vld [vmem:[#allocation2 + $0x128] sm:$0xff] }
  0x4e   : > { %643 = vperm.xlu1 %1832, %v620_v12   ;;  %646 = vperm.xlu0 %1831, %v621_v13   ;;  %v631_v32 = vsel %vm615_vm14, 1, %v1932_v1  ;;  %v1065_v38 = vsel %vm1049_vm2, 1, %v1932_v1  ;;  %vm1051_vm4 = vcmp.eq.s32.totalorder %v2147_v8, 0  ;;  %v1716_v44 = vpack.c.bf16 %v717_v41, %v716_v40  ;;  %v720_v2 = vld [vmem:[#allocation2 + $0x130] sm:$0xff]  ;;  %v721_v3 = vld [vmem:[#allocation2 + $0x138] sm:$0xff]  ;;  %v722_v7 = vld [vmem:[#allocation2 + $0x140] sm:$0xff] }
  0x4f   : > { %v1067_v43 = vsel %vm1051_vm4, 1, %v1932_v1  ;;  %vm1052_vm5 = vcmp.eq.s32.totalorder %v2150_v10, 0  ;;  %vm1053_vm6 = vcmp.eq.s32.totalorder %v2156_v11, 0  ;;  %vm1054_vm7 = vcmp.eq.s32.totalorder %v2162_v14, 0  ;;  %v723_v8 = vld [vmem:[#allocation2 + $0x148] sm:$0xff]  ;;  %v724_v13 = vld [vmem:[#allocation2 + $0x150] sm:$0xff] }
  0x50   : > { %1675 = vmatpush3.bf16.msra.mxu0 %v1672_v33  ;;  %1703 = vmatpush3.bf16.msra.mxu1 %v1700_v42  ;;  %v632_v33 = vsel %vm616_vm15, 1, %v1932_v1  ;;  %v1066_v42 = vsel %vm1050_vm3, 1, %v1932_v1  ;;  %v1068_v62 = vsel %vm1052_vm5, 1, %v1932_v1  ;;  %vm1055_vm8 = vcmp.eq.s32.totalorder %v2165_v15, 0  ;;  %v725_v14 = vld [vmem:[#allocation2 + $0x158] sm:$0xff]  ;;  %s1861_s7 = scalar_lea.vmem %s2344_s29, 2048 }
  0x51   : > { %1677 = vmatprep.subr.bf16.mxu0 %v1676_v39  ;;  %1705 = vmatprep.subr.bf16.mxu1 %v1704_v46  ;;  %v1070_v4 = vsel %vm1054_vm7, 1, %v1932_v1  ;;  %v1071_v5 = vsel %vm1055_vm8, 1, %v1932_v1  ;;  %v1724_v6 = vpack.c.bf16 %v721_v3, %v720_v2  ;;  %vm1056_vm9 = vcmp.eq.s32.totalorder %v2172_v18, 0  ;;  %v726_v18 = vld [vmem:[#allocation2 + $0x160] sm:$0xff]  ;;  %p1862_p6 = scmp.ne.s32.totalorder %s2344_s29, %s1861_s7  ;;  %p1869_p3 = scmp.lt.s32.totalorder %s1867_s10, %s1861_s7 }
  0x52   : > { %649 = vperm.xlu1 %1832, %v622_v16   ;;  %652 = vperm.xlu0 %1831, %v623_v17   ;;  %vm1057_vm10 = vcmp.eq.s32.totalorder %v2175_v19, 0  ;;  %v1072_v10 = vsel %vm1056_vm9, 1, %v1932_v1  ;;  %v1728_v12 = vpack.c.bf16 %v723_v8, %v722_v7  ;;  %vm1058_vm11 = vcmp.eq.s32.totalorder %v2182_v22, 0  ;;  %v727_v19 = vld [vmem:[#allocation2 + $0x168] sm:$0xff]  ;;  %v728_v8 = vld [vmem:[#allocation2 + $0x170] sm:$0xff] }
  0x53   : > { %v1073_v11 = vsel %vm1057_vm10, 1, %v1932_v1  ;;  %vm1059_vm12 = vcmp.eq.s32.totalorder %v2185_v23, 0  ;;  %v1074_v15 = vsel %vm1058_vm11, 1, %v1932_v1  ;;  %v1732_v17 = vpack.c.bf16 %v725_v14, %v724_v13  ;;  %v882_v13 = vld [vmem:[#allocation2 + $0x188] sm:$0xff]  ;;  %v883_v14 = vld [vmem:[#allocation2 + $0x190] sm:$0xff]  ;;  %p1863_p10 = pnand %p1862_p6, %p2408_p9  ;;  %p1870_p4 = por %p1869_p3, %p1868_p2 }
  0x54   : > { %1679 = vmatpush3.bf16.msra.mxu0 %v1676_v39  ;;  %1707 = vmatpush3.bf16.msra.mxu1 %v1704_v46  ;;  %v1712_v39 = vpack.c.bf16 %v715_v36, %v714_v35  ;;  %v718_v46 = vld [vmem:[#allocation2 + $0x120] sm:$0xff]  ;;  %v1075_v16 = vsel %vm1059_vm12, 1, %v1932_v1  ;;  %vm1060_vm13 = vcmp.eq.s32.totalorder %v2192_v26, 0  ;;  %vm1061_vm14 = vcmp.eq.s32.totalorder %v2195_v27, 0 }
  0x55   : > { %1709 = vmatprep.subr.bf16.mxu1 %v1708_v63  ;;  %v1720_v0 = vpack.c.bf16 %v719_v61, %v718_v46  ;;  %v1736_v22 = vpack.c.bf16 %v727_v19, %v726_v18  ;;  %vm1062_vm15 = vcmp.eq.s32.totalorder %v2202_v30, 0  ;;  %v885_v18 = vld [vmem:[#allocation2 + $0x1a0] sm:$0xff]  ;;  %v886_v19 = vld [vmem:[#allocation2 + $0x1a8] sm:$0xff]  ;;  %p1864_p12 = pneg %p1863_p10 }
  0x56   : > { %655 = vperm.xlu1 %1832, %v624_v20   ;;  %658 = vperm.xlu0 %1831, %v625_v21   ;;  %v1076_v20 = vsel %vm1060_vm13, 1, %v1932_v1  ;;  %v1077_v21 = vsel %vm1061_vm14, 1, %v1932_v1  ;;  %v1078_v23 = vsel %vm1062_vm15, 1, %v1932_v1 }
  0x57   : > { %1457 = vmatmul.mubr.f32.vlgmr.msra.gmra.mrb[0].mxu0 %v2060_v45  ;;  %1713 = vmatprep.subr.bf16.mxu0 %v1712_v39  ;;  %p1871_p7 = pnand %p1870_p4, %p1864_p12 }
  0x58   : > { %1459 = vmatprep.mubr.f32.mxu0 %v2063_v47  ;;  %1711 = vmatpush3.bf16.msra.mxu1 %v1708_v63  ;;  %v1069_v63 = vsel %vm1053_vm6, 1, %v1932_v1 }
  0x59   : > { %1715 = vmatpush3.bf16.msra.mxu0 %v1712_v39 }
  0x5a   : > { %661 = vperm.xlu1 %1832, %v626_v24   ;;  %664 = vperm.xlu0 %1831, %v627_v25   ;;  %v1286_v24 = vld [vmem:[%s2396_s3] ss:$0 sm:$0xff] }
  0x5b   : > { %1460 = vmatmul.mubr.f32.gmra.mrb[2].mxu0 %v2068_v48  ;;  %1717 = vmatprep.subr.bf16.mxu0 %v1716_v44 }
  0x5c   : > { %1462 = vmatprep.mubr.f32.mxu0 %v2071_v49 }
  0x5d   : > { %1719 = vmatpush3.bf16.msra.mxu0 %v1716_v44 }
  0x5e   : > { %667 = vperm.xlu1 %1832, %v628_v28   ;;  %670 = vperm.xlu0 %1831, %v629_v29  }
  0x5f   : > { %1463 = vmatmul.mubr.f32.gmra.mrb[4].mxu0 %v2076_v50  ;;  %1721 = vmatprep.subr.bf16.mxu0 %v1720_v0 }
  0x60   : > { %1465 = vmatprep.mubr.f32.mxu0 %v2079_v51 }
  0x61   : > { %1723 = vmatpush3.bf16.msra.mxu0 %v1720_v0 }
  0x62   : > { %673 = vperm.xlu1 %1832, %v630_v31   ;;  %676 = vperm.xlu0 %1831, %v631_v32  }
  0x63   : > { %1466 = vmatmul.mubr.f32.gmra.mrb[6].mxu0 %v2084_v52  ;;  %1725 = vmatprep.subr.bf16.mxu0 %v1724_v6 }
  0x64   : > { %1468 = vmatprep.mubr.f32.mxu0 %v2087_v53 }
  0x65   : > { %1727 = vmatpush3.bf16.msra.mxu0 %v1724_v6 }
  0x66   : > { %679 = vperm.xlu1 %1832, %v632_v33   ;;  %1080 = vperm.xlu0 %1831, %v1063_v34  }
  0x67   : > { %1469 = vmatmul.mubr.f32.gmra.mrb[8].mxu0 %v2092_v54  ;;  %1729 = vmatprep.subr.bf16.mxu0 %v1728_v12 }
  0x68   : > { %1471 = vmatprep.mubr.f32.mxu0 %v2095_v55 }
  0x69   : > { %1731 = vmatpush3.bf16.msra.mxu0 %v1728_v12  ;;  %v881_v12 = vld [vmem:[#allocation2 + $0x180] sm:$0xff] }
  0x6a   : > { %1083 = vperm.xlu1 %1832, %v1064_v37   ;;  %1086 = vperm.xlu0 %1831, %v1065_v38  }
  0x6b   : > { %1472 = vmatmul.mubr.f32.gmra.mrb[10].mxu0 %v2100_v56  ;;  %1733 = vmatprep.subr.bf16.mxu0 %v1732_v17 }
  0x6c   : > { %1474 = vmatprep.mubr.f32.mxu0 %v2103_v57 }
  0x6d   : > { %1735 = vmatpush3.bf16.msra.mxu0 %v1732_v17 }
  0x6e   : > { %1089 = vperm.xlu1 %1832, %v1066_v42   ;;  %1092 = vperm.xlu0 %1831, %v1067_v43  }
  0x6f   : > { %1475 = vmatmul.mubr.f32.gmra.mrb[12].mxu0 %v2108_v58  ;;  %1737 = vmatprep.subr.bf16.mxu0 %v1736_v22 }
  0x70   : > { %1477 = vmatprep.mubr.f32.mxu0 %v2111_v59 }
  0x71   : > { %1739 = vmatpush3.bf16.msra.mxu0 %v1736_v22  ;;  %v888_v22 = vld [vmem:[#allocation2 + $0x1b8] sm:$0xff] }
  0x72   : > { %1095 = vperm.xlu1 %1832, %v1068_v62   ;;  %1098 = vperm.xlu0 %1831, %v1069_v63  }
  0x73   : > { %1478 = vmatmul.mubr.f32.gmra.mrb[14].mxu0 %v2116_v60 }
  0x76   : > { %1101 = vperm.xlu1 %1832, %v1070_v4   ;;  %1104 = vperm.xlu0 %1831, %v1071_v5  }
  0x7a   : > { %1107 = vperm.xlu1 %1832, %v1072_v10   ;;  %1110 = vperm.xlu0 %1831, %v1073_v11   ;;  %v729_v10 = vld [vmem:[#allocation2 + $0x178] sm:$0xff] }
  0x7b   : > { %v1740_v11 = vpack.c.bf16 %v729_v10, %v728_v8 }
  0x7d   : > { %1741 = vmatprep.subr.bf16.mxu0 %v1740_v11 }
  0x7e   : > { %1113 = vperm.xlu1 %1832, %v1074_v15   ;;  %1116 = vperm.xlu0 %1831, %v1075_v16   ;;  %v1744_v15 = vpack.c.bf16 %v882_v13, %v881_v12  ;;  %v884_v16 = vld [vmem:[#allocation2 + $0x198] sm:$0xff] }
  0x7f   : > { %1743 = vmatpush3.bf16.msra.mxu0 %v1740_v11  ;;  %v1748_v17 = vpack.c.bf16 %v884_v16, %v883_v14 }
  0x80   : > { %1745 = vmatprep.subr.bf16.mxu1 %v1744_v15 }
  0x82   : > { %1119 = vperm.xlu1 %1832, %v1076_v20   ;;  %1122 = vperm.xlu0 %1831, %v1077_v21   ;;  %v1752_v20 = vpack.c.bf16 %v886_v19, %v885_v18  ;;  %v887_v21 = vld [vmem:[#allocation2 + $0x1b0] sm:$0xff] }
  0x86   : > { %1125 = vperm.xlu1 %1832, %v1078_v23   ;;  %v1756_v23 = vpack.c.bf16 %v888_v22, %v887_v21 }
 0x12a   : > { %v1458_v25 = vpop.f32.mrb[0].mxu0 }
 0x12b   : > { %v355_v26 = vpop.f32.mrb[1].mxu0  ;;  %v361_v28 = vadd.f32 %v1458_v25, %v1286_v24  ;;  %v890_v25 = vld [vmem:[#allocation2 + $0x1c8] sm:$0xff] }
 0x12c   : > { %v356_v27 = vadd.f32 %v1286_v24, %v355_v26 }
 0x12e   : > { %v1461_v29 = vpop.f32.mrb[2].mxu0  ;;  %1512 = vmatprep.mubr.f32.mxu1 %v356_v27  ;;  %v891_v27 = vld [vmem:[#allocation2 + $0x1d0] sm:$0xff] }
 0x12f   : > { %v365_v31 = vpop.f32.mrb[3].mxu0  ;;  %1513 = vmatmul.mubr.f32.vlgmr.msra.gmra.mrb[0].mxu1 %v361_v28  ;;  %v371_v32 = vadd.f32 %v1461_v29, %v1286_v24  ;;  %v892_v28 = vld [vmem:[#allocation2 + $0x1d8] sm:$0xff] }
 0x130   : > { %v366_v30 = vadd.f32 %v1286_v24, %v365_v31  ;;  %1747 = vmatpush3.bf16.msra.mxu1 %v1744_v15  ;;  %v1764_v29 = vpack.c.bf16 %v892_v28, %v891_v27  ;;  %v893_v31 = vld [vmem:[#allocation2 + $0x1e0] sm:$0xff] }
 0x131   : > { %1749 = vmatprep.subr.bf16.mxu1 %v1748_v17 }
 0x132   : > { %v1464_v33 = vpop.f32.mrb[4].mxu0  ;;  %1515 = vmatprep.mubr.f32.mxu1 %v366_v30  ;;  %v894_v30 = vld [vmem:[#allocation2 + $0x1e8] sm:$0xff] }
 0x133   : > { %v375_v34 = vpop.f32.mrb[5].mxu0  ;;  %1516 = vmatmul.mubr.f32.gmra.mrb[2].mxu1 %v371_v32  ;;  %v381_v35 = vadd.f32 %v1464_v33, %v1286_v24  ;;  %v1768_v32 = vpack.c.bf16 %v894_v30, %v893_v31  ;;  %v635_v33 = vpop.permute.xlu0 %634 }
 0x134   : > { %v376_v1 = vadd.f32 %v1286_v24, %v375_v34  ;;  %1751 = vmatpush3.bf16.msra.mxu1 %v1748_v17  ;;  %v641_v34 = vpop.permute.xlu1 %640  ;;  %vm681_vm0 = vcmp.eq.s32.totalorder %v635_v33, 1 }
 0x135   : > { %1753 = vmatprep.subr.bf16.mxu1 %v1752_v20  ;;  %vm683_vm2 = vcmp.eq.s32.totalorder %v641_v34, 1 }
 0x136   : > { %v1467_v36 = vpop.f32.mrb[6].mxu0  ;;  %1518 = vmatprep.mubr.f32.mxu1 %v376_v1 }
 0x137   : > { %v385_v37 = vpop.f32.mrb[7].mxu0  ;;  %1519 = vmatmul.mubr.f32.gmra.mrb[4].mxu1 %v381_v35  ;;  %v391_v39 = vadd.f32 %v1467_v36, %v1286_v24  ;;  %v638_v1 = vpop.permute.xlu0 %637  ;;  %v2246_v36 = vld [vmem:[%s2396_s3 + $0x1] ss:$0 sm:$0xff] }
 0x138   : > { %v386_v38 = vadd.f32 %v1286_v24, %v385_v37  ;;  %1755 = vmatpush3.bf16.msra.mxu1 %v1752_v20  ;;  %v644_v35 = vpop.permute.xlu1 %643  ;;  %vm682_vm1 = vcmp.eq.s32.totalorder %v638_v1, 1 }
 0x139   : > { %1757 = vmatprep.subr.bf16.mxu1 %v1756_v23  ;;  %vm684_vm3 = vcmp.eq.s32.totalorder %v644_v35, 1 }
 0x13a   : > { %v1470_v40 = vpop.f32.mrb[8].mxu0  ;;  %1521 = vmatprep.mubr.f32.mxu1 %v386_v38 }
 0x13b   : > { %v395_v41 = vpop.f32.mrb[9].mxu0  ;;  %1522 = vmatmul.mubr.f32.gmra.mrb[6].mxu1 %v391_v39  ;;  %v401_v43 = vadd.f32 %v1470_v40, %v1286_v24  ;;  %v647_v37 = vpop.permute.xlu0 %646 }
 0x13c   : > { %v396_v42 = vadd.f32 %v1286_v24, %v395_v41  ;;  %1759 = vmatpush3.bf16.msra.mxu1 %v1756_v23  ;;  %v650_v39 = vpop.permute.xlu1 %649  ;;  %vm685_vm4 = vcmp.eq.s32.totalorder %v647_v37, 1 }
 0x13d   : > { %vm686_vm5 = vcmp.eq.s32.totalorder %v650_v39, 1 }
 0x13e   : > { %v1473_v44 = vpop.f32.mrb[10].mxu0  ;;  %1524 = vmatprep.mubr.f32.mxu1 %v396_v42 }
 0x13f   : > { %v405_v46 = vpop.f32.mrb[11].mxu0  ;;  %1525 = vmatmul.mubr.f32.gmra.mrb[8].mxu1 %v401_v43  ;;  %v411_v62 = vadd.f32 %v1473_v44, %v1286_v24 }
 0x140   : > { %v406_v61 = vadd.f32 %v1286_v24, %v405_v46 }
 0x142   : > { %v1476_v63 = vpop.f32.mrb[12].mxu0  ;;  %1527 = vmatprep.mubr.f32.mxu1 %v406_v61 }
 0x143   : > { %v415_v0 = vpop.f32.mrb[13].mxu0  ;;  %1528 = vmatmul.mubr.f32.gmra.mrb[10].mxu1 %v411_v62  ;;  %v421_v3 = vadd.f32 %v1476_v63, %v1286_v24  ;;  %v653_v63 = vpop.permute.xlu0 %652 }
 0x144   : > { %v416_v2 = vadd.f32 %v1286_v24, %v415_v0  ;;  %vm687_vm6 = vcmp.eq.s32.totalorder %v653_v63, 1 }
 0x146   : > { %v1479_v4 = vpop.f32.mrb[14].mxu0  ;;  %1530 = vmatprep.mubr.f32.mxu1 %v416_v2  ;;  %v656_v2 = vpop.permute.xlu1 %655 }
 0x147   : > { %v425_v5 = vpop.f32.mrb[15].mxu0  ;;  %1531 = vmatmul.mubr.f32.gmra.mrb[12].mxu1 %v421_v3  ;;  %v431_v7 = vadd.f32 %v1479_v4, %v1286_v24  ;;  %v659_v10 = vpop.permute.xlu0 %658  ;;  %vm688_vm7 = vcmp.eq.s32.totalorder %v656_v2, 1  ;;  %v895_v2 = vld [vmem:[#allocation2 + $0x1f0] sm:$0xff] }
 0x148   : > { %v426_v6 = vadd.f32 %v1286_v24, %v425_v5  ;;  %v889_v24 = vld [vmem:[#allocation2 + $0x1c0] sm:$0xff]  ;;  %vm689_vm8 = vcmp.eq.s32.totalorder %v659_v10, 1 }
 0x149   : > { %v1760_v26 = vpack.c.bf16 %v890_v25, %v889_v24 }
 0x14a   : > { %1533 = vmatprep.mubr.f32.mxu1 %v426_v6  ;;  %v662_v13 = vpop.permute.xlu1 %661 }
 0x14b   : > { %1534 = vmatmul.mubr.f32.gmra.mrb[14].mxu1 %v431_v7  ;;  %1761 = vmatprep.subr.bf16.mxu1 %v1760_v26  ;;  %v665_v23 = vpop.permute.xlu0 %664  ;;  %vm690_vm9 = vcmp.eq.s32.totalorder %v662_v13, 1 }
 0x14c   : > { %1763 = vmatpush3.bf16.msra.mxu1 %v1760_v26  ;;  %vm691_vm10 = vcmp.eq.s32.totalorder %v665_v23, 1 }
 0x14d   : > { %1765 = vmatprep.subr.bf16.mxu1 %v1764_v29 }
 0x14e   : > { %v668_v25 = vpop.permute.xlu1 %667 }
 0x14f   : > { %vm692_vm11 = vcmp.eq.s32.totalorder %v668_v25, 1 }
 0x150   : > { %1767 = vmatpush3.bf16.msra.mxu1 %v1764_v29 }
 0x151   : > { %1769 = vmatprep.subr.bf16.mxu1 %v1768_v32 }
 0x152   : > { %v674_v1 = vpop.permute.xlu1 %673 }
 0x153   : > { %vm694_vm13 = vcmp.eq.s32.totalorder %v674_v1, 1 }
 0x154   : > { %1771 = vmatpush3.bf16.msra.mxu1 %v1768_v32  ;;  %v671_v32 = vpop.permute.xlu0 %670 }
 0x155   : > { %vm693_vm12 = vcmp.eq.s32.totalorder %v671_v32, 1 }
 0x202   : > { %v1514_v38 = vpop.f32.mrb[0].mxu1 }
 0x203   : > { %v528_v40 = vadd.f32 %v1514_v38, %v2246_v36  ;;  %v522_v41 = vpop.f32.mrb[1].mxu1 }
 0x204   : > { %v523_v42 = vadd.f32 %v2246_v36, %v522_v41 }
 0x205   : > { %v698_v46 = vsel %vm682_vm1, %v528_v40, %v2060_v45 }
 0x206   : > { %v1517_v43 = vpop.f32.mrb[2].mxu1  ;;  %v697_v44 = vsel %vm681_vm0, %v523_v42, %v2056_v9 }
 0x207   : > { %v538_v61 = vadd.f32 %v1517_v43, %v2246_v36  ;;  %v532_v62 = vpop.f32.mrb[3].mxu1  ;;  %1568 = vmatprep.mubr.f32.mxu0 %v697_v44 }
 0x208   : > { %v533_v0 = vadd.f32 %v2246_v36, %v532_v62  ;;  %1569 = vmatmul.mubr.f32.vlgmr.msra.gmra.mrb[16].mxu0 %v698_v46  ;;  %v677_v46 = vpop.permute.xlu0 %676  ;;  %v680_v62 = vpop.permute.xlu1 %679 }
 0x209   : > { %v700_v7 = vsel %vm684_vm3, %v538_v61, %v2068_v48  ;;  %vm695_vm14 = vcmp.eq.s32.totalorder %v677_v46, 1  ;;  %vm696_vm15 = vcmp.eq.s32.totalorder %v680_v62, 1 }
 0x20a   : > { %v1520_v3 = vpop.f32.mrb[4].mxu1  ;;  %v699_v4 = vsel %vm683_vm2, %v533_v0, %v2063_v47 }
 0x20b   : > { %v548_v5 = vadd.f32 %v1520_v3, %v2246_v36  ;;  %v542_v6 = vpop.f32.mrb[5].mxu1  ;;  %1571 = vmatprep.mubr.f32.mxu0 %v699_v4  ;;  %v896_v3 = vld [vmem:[#allocation2 + $0x1f8] sm:$0xff] }
 0x20c   : > { %v543_v8 = vadd.f32 %v2246_v36, %v542_v6  ;;  %1572 = vmatmul.mubr.f32.gmra.mrb[18].mxu0 %v700_v7  ;;  %v1772_v4 = vpack.c.bf16 %v896_v3, %v895_v2 }
 0x20d   : > { %v702_v16 = vsel %vm686_vm5, %v548_v5, %v2076_v50  ;;  %v1288_v5 = vld [vmem:[%s2396_s3 + $0x2] ss:$0 sm:$0xff] }
 0x20e   : > { %v1523_v11 = vpop.f32.mrb[6].mxu1  ;;  %v701_v12 = vsel %vm685_vm4, %v543_v8, %v2071_v49  ;;  %1773 = vmatprep.subr.bf16.mxu1 %v1772_v4 }
 0x20f   : > { %v558_v14 = vadd.f32 %v1523_v11, %v2246_v36  ;;  %v552_v15 = vpop.f32.mrb[7].mxu1  ;;  %1574 = vmatprep.mubr.f32.mxu0 %v701_v12  ;;  %1775 = vmatpush3.bf16.msra.mxu1 %v1772_v4 }
 0x210   : > { %v553_v17 = vadd.f32 %v2246_v36, %v552_v15  ;;  %1575 = vmatmul.mubr.f32.gmra.mrb[20].mxu0 %v702_v16 }
 0x211   : > { %v704_v22 = vsel %vm688_vm7, %v558_v14, %v2084_v52 }
 0x212   : > { %v1526_v18 = vpop.f32.mrb[8].mxu1  ;;  %v703_v19 = vsel %vm687_vm6, %v553_v17, %v2079_v51 }
 0x213   : > { %v568_v20 = vadd.f32 %v1526_v18, %v2246_v36  ;;  %v562_v21 = vpop.f32.mrb[9].mxu1  ;;  %1577 = vmatprep.mubr.f32.mxu0 %v703_v19 }
 0x214   : > { %v563_v24 = vadd.f32 %v2246_v36, %v562_v21  ;;  %1578 = vmatmul.mubr.f32.gmra.mrb[22].mxu0 %v704_v22 }
 0x215   : > { %v706_v31 = vsel %vm690_vm9, %v568_v20, %v2092_v54 }
 0x216   : > { %v1529_v26 = vpop.f32.mrb[10].mxu1  ;;  %v705_v27 = vsel %vm689_vm8, %v563_v24, %v2087_v53 }
 0x217   : > { %v578_v28 = vadd.f32 %v1529_v26, %v2246_v36  ;;  %v572_v29 = vpop.f32.mrb[11].mxu1  ;;  %1580 = vmatprep.mubr.f32.mxu0 %v705_v27 }
 0x218   : > { %v573_v30 = vadd.f32 %v2246_v36, %v572_v29  ;;  %1581 = vmatmul.mubr.f32.gmra.mrb[24].mxu0 %v706_v31 }
 0x219   : > { %v708_v38 = vsel %vm692_vm11, %v578_v28, %v2100_v56 }
 0x21a   : > { %v1532_v33 = vpop.f32.mrb[12].mxu1  ;;  %v707_v34 = vsel %vm691_vm10, %v573_v30, %v2095_v55 }
 0x21b   : > { %v588_v35 = vadd.f32 %v1532_v33, %v2246_v36  ;;  %v582_v37 = vpop.f32.mrb[13].mxu1  ;;  %1583 = vmatprep.mubr.f32.mxu0 %v707_v34 }
 0x21c   : > { %v583_v39 = vadd.f32 %v2246_v36, %v582_v37  ;;  %1584 = vmatmul.mubr.f32.gmra.mrb[26].mxu0 %v708_v38  ;;  %v1084_v38 = vpop.permute.xlu1 %1083 }
 0x21d   : > { %v710_v44 = vsel %vm694_vm13, %v588_v35, %v2108_v58  ;;  %vm1128_vm0 = vcmp.eq.s32.totalorder %v1084_v38, 1 }
 0x21e   : > { %v1535_v40 = vpop.f32.mrb[14].mxu1  ;;  %v709_v41 = vsel %vm693_vm12, %v583_v39, %v2103_v57  ;;  %v1081_v39 = vpop.permute.xlu0 %1080 }
 0x21f   : > { %v598_v42 = vadd.f32 %v1535_v40, %v2246_v36  ;;  %v592_v43 = vpop.f32.mrb[15].mxu1  ;;  %1586 = vmatprep.mubr.f32.mxu0 %v709_v41  ;;  %vm1127_vm1 = vcmp.eq.s32.totalorder %v1081_v39, 1 }
 0x220   : > { %v593_v61 = vadd.f32 %v2246_v36, %v592_v43  ;;  %1587 = vmatmul.mubr.f32.gmra.mrb[28].mxu0 %v710_v44  ;;  %v1090_v40 = vpop.permute.xlu1 %1089  ;;  %v2289_v44 = vld [vmem:[%s2396_s3 + $0x3] ss:$0 sm:$0xff] }
 0x221   : > { %v712_v0 = vsel %vm696_vm15, %v598_v42, %v2116_v60  ;;  %vm1130_vm2 = vcmp.eq.s32.totalorder %v1090_v40, 1 }
 0x222   : > { %v711_v63 = vsel %vm695_vm14, %v593_v61, %v2111_v59  ;;  %v1087_v41 = vpop.permute.xlu0 %1086 }
 0x223   : > { %1589 = vmatprep.mubr.f32.mxu0 %v711_v63  ;;  %vm1129_vm3 = vcmp.eq.s32.totalorder %v1087_v41, 1 }
 0x224   : > { %1590 = vmatmul.mubr.f32.gmra.mrb[30].mxu0 %v712_v0  ;;  %v1096_v42 = vpop.permute.xlu1 %1095 }
 0x225   : > { %vm1132_vm4 = vcmp.eq.s32.totalorder %v1096_v42, 1 }
 0x226   : > { %v1093_v43 = vpop.permute.xlu0 %1092 }
 0x227   : > { %vm1131_vm5 = vcmp.eq.s32.totalorder %v1093_v43, 1 }
 0x228   : > { %v1102_v0 = vpop.permute.xlu1 %1101 }
 0x229   : > { %vm1134_vm6 = vcmp.eq.s32.totalorder %v1102_v0, 1 }
 0x22a   : > { %v1099_v3 = vpop.permute.xlu0 %1098 }
 0x22b   : > { %vm1133_vm7 = vcmp.eq.s32.totalorder %v1099_v3, 1 }
 0x2db   : > { %v1570_v36 = vpop.f32.mrb[16].mxu0 }
 0x2dc   : > { %v801_v6 = vpop.f32.mrb[17].mxu0  ;;  %v807_v8 = vadd.f32 %v1570_v36, %v1288_v5 }
 0x2dd   : > { %v802_v7 = vadd.f32 %v1288_v5, %v801_v6 }
 0x2df   : > { %v1573_v10 = vpop.f32.mrb[18].mxu0  ;;  %1624 = vmatprep.mubr.f32.mxu1 %v802_v7 }
 0x2e0   : > { %v811_v11 = vpop.f32.mrb[19].mxu0  ;;  %1625 = vmatmul.mubr.f32.vlgmr.msra.gmra.mrb[16].mxu1 %v807_v8  ;;  %v817_v13 = vadd.f32 %v1573_v10, %v1288_v5 }
 0x2e1   : > { %v812_v12 = vadd.f32 %v1288_v5, %v811_v11  ;;  %v1108_v11 = vpop.permute.xlu1 %1107 }
 0x2e2   : > { %vm1136_vm8 = vcmp.eq.s32.totalorder %v1108_v11, 1 }
 0x2e3   : > { %v1576_v14 = vpop.f32.mrb[20].mxu0  ;;  %1627 = vmatprep.mubr.f32.mxu1 %v812_v12 }
 0x2e4   : > { %v821_v15 = vpop.f32.mrb[21].mxu0  ;;  %1628 = vmatmul.mubr.f32.gmra.mrb[18].mxu1 %v817_v13  ;;  %v827_v17 = vadd.f32 %v1576_v14, %v1288_v5  ;;  %v1105_v13 = vpop.permute.xlu0 %1104 }
 0x2e5   : > { %v822_v16 = vadd.f32 %v1288_v5, %v821_v15  ;;  %vm1135_vm9 = vcmp.eq.s32.totalorder %v1105_v13, 1 }
 0x2e7   : > { %v1579_v18 = vpop.f32.mrb[22].mxu0  ;;  %1630 = vmatprep.mubr.f32.mxu1 %v822_v16 }
 0x2e8   : > { %v831_v19 = vpop.f32.mrb[23].mxu0  ;;  %1631 = vmatmul.mubr.f32.gmra.mrb[20].mxu1 %v827_v17  ;;  %v837_v21 = vadd.f32 %v1579_v18, %v1288_v5 }
 0x2e9   : > { %v832_v20 = vadd.f32 %v1288_v5, %v831_v19  ;;  %v1114_v19 = vpop.permute.xlu1 %1113 }
 0x2ea   : > { %vm1138_vm10 = vcmp.eq.s32.totalorder %v1114_v19, 1 }
 0x2eb   : > { %v1582_v22 = vpop.f32.mrb[24].mxu0  ;;  %1633 = vmatprep.mubr.f32.mxu1 %v832_v20 }
 0x2ec   : > { %v841_v23 = vpop.f32.mrb[25].mxu0  ;;  %1634 = vmatmul.mubr.f32.gmra.mrb[22].mxu1 %v837_v21  ;;  %v847_v25 = vadd.f32 %v1582_v22, %v1288_v5  ;;  %v1111_v21 = vpop.permute.xlu0 %1110 }
 0x2ed   : > { %v842_v24 = vadd.f32 %v1288_v5, %v841_v23  ;;  %vm1137_vm11 = vcmp.eq.s32.totalorder %v1111_v21, 1 }
 0x2ef   : > { %v1585_v26 = vpop.f32.mrb[26].mxu0  ;;  %1636 = vmatprep.mubr.f32.mxu1 %v842_v24 }
 0x2f0   : > { %v851_v27 = vpop.f32.mrb[27].mxu0  ;;  %1637 = vmatmul.mubr.f32.gmra.mrb[24].mxu1 %v847_v25  ;;  %v857_v29 = vadd.f32 %v1585_v26, %v1288_v5 }
 0x2f1   : > { %v852_v28 = vadd.f32 %v1288_v5, %v851_v27  ;;  %v1120_v27 = vpop.permute.xlu1 %1119 }
 0x2f2   : > { %vm1140_vm12 = vcmp.eq.s32.totalorder %v1120_v27, 1 }
 0x2f3   : > { %v1588_v31 = vpop.f32.mrb[28].mxu0  ;;  %1639 = vmatprep.mubr.f32.mxu1 %v852_v28 }
 0x2f4   : > { %v861_v30 = vpop.f32.mrb[29].mxu0  ;;  %1640 = vmatmul.mubr.f32.gmra.mrb[26].mxu1 %v857_v29  ;;  %v867_v33 = vadd.f32 %v1588_v31, %v1288_v5  ;;  %v1117_v29 = vpop.permute.xlu0 %1116 }
 0x2f5   : > { %v862_v32 = vadd.f32 %v1288_v5, %v861_v30  ;;  %vm1139_vm13 = vcmp.eq.s32.totalorder %v1117_v29, 1 }
 0x2f7   : > { %v1591_v34 = vpop.f32.mrb[30].mxu0  ;;  %1642 = vmatprep.mubr.f32.mxu1 %v862_v32 }
 0x2f8   : > { %v871_v1 = vpop.f32.mrb[31].mxu0  ;;  %1643 = vmatmul.mubr.f32.gmra.mrb[28].mxu1 %v867_v33  ;;  %v877_v37 = vadd.f32 %v1591_v34, %v1288_v5 }
 0x2f9   : > { %v872_v35 = vadd.f32 %v1288_v5, %v871_v1  ;;  %v1126_v1 = vpop.permute.xlu1 %1125 }
 0x2fa   : > { %vm1142_vm14 = vcmp.eq.s32.totalorder %v1126_v1, 1 }
 0x2fb   : > { %1645 = vmatprep.mubr.f32.mxu1 %v872_v35 }
 0x2fc   : > { %1646 = vmatmul.mubr.f32.gmra.mrb[30].mxu1 %v877_v37 }
 0x3b3   : > { %v1626_v46 = vpop.f32.mrb[16].mxu1 }
 0x3b4   : > { %v974_v61 = vadd.f32 %v1626_v46, %v2289_v44  ;;  %v968_v62 = vpop.f32.mrb[17].mxu1 }
 0x3b5   : > { %v969_v63 = vadd.f32 %v2289_v44, %v968_v62 }
 0x3b6   : > { %v1144_v2 = vsel %vm1128_vm0, %v2060_v45, %v974_v61 }
 0x3b7   : > { %1160 = vst [vmem:[%s2294_s28 + $0x8] sm:$0xff] %v1144_v2  ;;  %v1143_v4 = vsel %vm1127_vm1, %v2056_v9, %v969_v63  ;;  %v1629_v5 = vpop.f32.mrb[18].mxu1 }
 0x3b8   : > { %1159 = vst [vmem:[%s2294_s28] sm:$0xff] %v1143_v4  ;;  %v984_v36 = vadd.f32 %v1629_v5, %v2289_v44  ;;  %v978_v6 = vpop.f32.mrb[19].mxu1 }
 0x3b9   : > { %v979_v7 = vadd.f32 %v2289_v44, %v978_v6 }
 0x3ba   : > { %v1146_v45 = vsel %vm1130_vm2, %v2068_v48, %v984_v36 }
 0x3bb   : > { %1162 = vst [vmem:[%s2294_s28 + $0x18] sm:$0xff] %v1146_v45  ;;  %v1145_v8 = vsel %vm1129_vm3, %v2063_v47, %v979_v7  ;;  %v1632_v10 = vpop.f32.mrb[20].mxu1 }
 0x3bc   : > { %1161 = vst [vmem:[%s2294_s28 + $0x10] sm:$0xff] %v1145_v8  ;;  %v994_v9 = vadd.f32 %v1632_v10, %v2289_v44  ;;  %v988_v12 = vpop.f32.mrb[21].mxu1 }
 0x3bd   : > { %v989_v14 = vadd.f32 %v2289_v44, %v988_v12 }
 0x3be   : > { %v1148_v15 = vsel %vm1132_vm4, %v2076_v50, %v994_v9 }
 0x3bf   : > { %1164 = vst [vmem:[%s2294_s28 + $0x28] sm:$0xff] %v1148_v15  ;;  %v1147_v48 = vsel %vm1131_vm5, %v2071_v49, %v989_v14  ;;  %v1635_v16 = vpop.f32.mrb[22].mxu1 }
 0x3c0   : > { %1163 = vst [vmem:[%s2294_s28 + $0x20] sm:$0xff] %v1147_v48  ;;  %v1004_v47 = vadd.f32 %v1635_v16, %v2289_v44  ;;  %v998_v17 = vpop.f32.mrb[23].mxu1 }
 0x3c1   : > { %v999_v18 = vadd.f32 %v2289_v44, %v998_v17 }
 0x3c2   : > { %v1150_v20 = vsel %vm1134_vm6, %v2084_v52, %v1004_v47 }
 0x3c3   : > { %1166 = vst [vmem:[%s2294_s28 + $0x38] sm:$0xff] %v1150_v20  ;;  %v1149_v50 = vsel %vm1133_vm7, %v2079_v51, %v999_v18  ;;  %v1638_v22 = vpop.f32.mrb[24].mxu1 }
 0x3c4   : > { %1165 = vst [vmem:[%s2294_s28 + $0x30] sm:$0xff] %v1149_v50  ;;  %v1014_v49 = vadd.f32 %v1638_v22, %v2289_v44  ;;  %v1008_v23 = vpop.f32.mrb[25].mxu1 }
 0x3c5   : > { %v1009_v24 = vadd.f32 %v2289_v44, %v1008_v23 }
 0x3c6   : > { %v1152_v25 = vsel %vm1136_vm8, %v2092_v54, %v1014_v49 }
 0x3c7   : > { %1168 = vst [vmem:[%s2294_s28 + $0x48] sm:$0xff] %v1152_v25  ;;  %v1151_v52 = vsel %vm1135_vm9, %v2087_v53, %v1009_v24  ;;  %v1641_v26 = vpop.f32.mrb[26].mxu1 }
 0x3c8   : > { %1167 = vst [vmem:[%s2294_s28 + $0x40] sm:$0xff] %v1151_v52  ;;  %v1024_v51 = vadd.f32 %v1641_v26, %v2289_v44  ;;  %v1018_v28 = vpop.f32.mrb[27].mxu1 }
 0x3c9   : > { %v1019_v31 = vadd.f32 %v2289_v44, %v1018_v28 }
 0x3ca   : > { %v1154_v54 = vsel %vm1138_vm10, %v2100_v56, %v1024_v51  ;;  %v1123_v56 = vpop.permute.xlu0 %1122 }
 0x3cb   : > { %1170 = vst [vmem:[%s2294_s28 + $0x58] sm:$0xff] %v1154_v54  ;;  %v1153_v30 = vsel %vm1137_vm11, %v2095_v55, %v1019_v31  ;;  %v1644_v53 = vpop.f32.mrb[28].mxu1  ;;  %vm1141_vm15 = vcmp.eq.s32.totalorder %v1123_v56, 1 }
 0x3cc   : > { %1169 = vst [vmem:[%s2294_s28 + $0x50] sm:$0xff] %v1153_v30  ;;  %v1034_v32 = vadd.f32 %v1644_v53, %v2289_v44  ;;  %v1028_v33 = vpop.f32.mrb[29].mxu1 }
 0x3cd   : > { %v1029_v34 = vadd.f32 %v2289_v44, %v1028_v33 }
 0x3ce   : > { %v1156_v35 = vsel %vm1140_vm12, %v2108_v58, %v1034_v32 }
 0x3cf   : > { %1172 = vst [vmem:[%s2294_s28 + $0x68] sm:$0xff] %v1156_v35  ;;  %v1155_v55 = vsel %vm1139_vm13, %v2103_v57, %v1029_v34  ;;  %v1647_v37 = vpop.f32.mrb[30].mxu1 }
 0x3d0   : > { %1171 = vst [vmem:[%s2294_s28 + $0x60] sm:$0xff] %v1155_v55  ;;  %v1044_v38 = vadd.f32 %v1647_v37, %v2289_v44  ;;  %v1038_v39 = vpop.f32.mrb[31].mxu1 }
 0x3d1   : > { %v1039_v40 = vadd.f32 %v2289_v44, %v1038_v39 }
 0x3d2   : > { %v1158_v57 = vsel %vm1142_vm14, %v2116_v60, %v1044_v38 }
 0x3d3   : > { %1174 = vst [vmem:[%s2294_s28 + $0x78] sm:$0xff] %v1158_v57  ;;  %v1157_v58 = vsel %vm1141_vm15, %v2111_v59, %v1039_v40 }
 0x3d4   : > { %1173 = vst [vmem:[%s2294_s28 + $0x70] sm:$0xff] %v1157_v58 }
 0x3d5   : > { %1874 = shalt.err (!%p1871_p7)
}
 0x3d6   : > { %s1875_s11 = scalar_lea.hbm %s2342_s19, 2048  ;;  %s1879_s14 = scalar_lea.hbm %s2397_s4, 4096 }
 0x3d7   : > { %p1876_p8 = scmp.ne.s32.totalorder %s2342_s19, %s1875_s11  ;;  %p1880_p1 = scmp.lt.u32.totalorder %s2342_s19, %s2397_s4 }
 0x3d8   : > { %p1881_p0 = scmp.lt.u32.totalorder %s1879_s14, %s1875_s11  ;;  %p1883_p6 = scmp.lt.u32.totalorder %s1875_s11, %s2342_s19 }
 0x3d9   : > { %p1877_p11 = pnand %p1876_p8, %p2408_p9 }
 0x3da   : > { %p1882_p5 = por %p1881_p0, %p1880_p1 }
 0x3db   : > { %p1878_p13 = pneg %p1877_p11 }
 0x3dc   : > { %p1884_p10 = por %p1883_p6, %p1882_p5 }
 0x3de   : > { %p1885_p12 = pnand %p1884_p10, %p1878_p13 }
 0x3e0   : > { %1888 = shalt.err (!%p1885_p12)
}
 0x3e1   : > { %s1934_s23 = smov 128   ;;  %s1935_s28 = smov 8  }
 0x3e2   : > { %1780 = dma.vmem_to_hbm [thread:$0]  (%p2408_p9), %s2344_s29, 2048, %s2342_s19, %s2352_s6, %s1934_s23, %s1934_s23, %s1935_s28  }
 0x3e3 PF: > { %p1792_p2 = scmp.ge.s32.totalorder %s1927_s18, 2  ;;  %s1204_s27 = sand.u32 1, %s1915_s15  }
 0x3e4   : > { %p2409_p3 = scmp.ne.s32.totalorder %s2402_s26, 0  ;;  %s1205_s30 = scalar_lea.sflag [#allocation4], %s1204_s27 }
 0x3e6   : > { %p1787_p4 = pnand %p1792_p2, %p2409_p3 }
 0x3e8   : > { %1910 = dma.done.wait (!%p1787_p4), %s1205_s30, 2048  }
 0x3e9   : > { %1912 = vsyncadd (!%p1787_p4), %s1205_s30, 4294965248  ;;  %p15_p7 = scmp.ge.s32.totalorder %s1986_s21, 4   ;;  %s2410_s15 = smov %s1919_s16 }
 0x3ea   : > { %s2411_s16 = smov %s1923_s17  ;;  %s2412_s17 = smov %s1997_s24 }
 0x3eb   : > { %s2413_s18 = smov %s1986_s21  ;;  %17 = sbr.rel (!%p15_p7) target bundleno = 4 (0x4), region = 82 }
 0x3f2   :  { %1210 = vsyncpa [#allocation3], 1 }
 0x3f3   :  { %1212 = vsyncpa [#allocation3 + $0x1], 1 }
 0x3f4   :  { %1213 = vsyncpa [#allocation4], 1 }
 0x3f5   :  { %1215 = vsyncpa [#allocation4 + $0x1], 1 }

</bundles_post_ra>
